<compile_context>
chip_gen: v5e
topology: v5e:2x2
jax: 0.10.0
libtpu: 0.0.40
codegen_flags: <defaults>
</compile_context>

<pallas_src>
import functools

import jax
import jax.numpy as jnp
from jax.experimental import pallas as pl
from jax.experimental.pallas import tpu as pltpu

_LANE = 128
_SUBLANE = 8
# 2048 rows * 128 lanes * 4 B = 1 MiB per input tile; with 2 inputs double-buffered
# that's ~4 MiB of VMEM — comfortably inside v5e/v6e/v7x scoped limits.
_MAX_TILE_ROWS = 2048


def _weighted_loss_kernel(scale_ref, pred_ref, tgt_ref, out_ref, acc_ref, *, loss_type):
    """Accumulates sum(elementwise_loss) over lane-dense (TR, 128) tiles."""

    @pl.when(pl.program_id(0) == 0)
    def _init():
        acc_ref[...] = jnp.zeros_like(acc_ref)

    d = pred_ref[...].astype(jnp.float32) - tgt_ref[...].astype(jnp.float32)
    if loss_type == "l2":
        contrib = d * d
    elif loss_type == "l1":
        contrib = jnp.abs(d)
    else:
        raise ValueError(f"unsupported loss_type: {loss_type}")
    acc_ref[...] += jnp.sum(contrib, keepdims=True)  # (1, 1) partial sum

    @pl.when(pl.program_id(0) == pl.num_programs(0) - 1)
    def _finalize():
        # mean + scalar weighting folded into one multiply: sum * (weighted / count)
        out_ref[...] = acc_ref[...] * scale_ref[0, 0]


def weighted_loss(pred, target, weighted=1.0, *, loss_type="l2"):
    """Pallas port of WeightedLoss.forward: mean(_loss(pred, target) * weighted)."""
    assert pred.shape == target.shape, (pred.shape, target.shape)
    count = pred.size

    # Flatten to a lane-dense (rows, 128) slab; zero padding contributes 0 loss.
    p = pred.reshape(-1)
    t = target.reshape(-1)
    rows_needed = pl.cdiv(count, _LANE)
    rows_aligned = pl.cdiv(rows_needed, _SUBLANE) * _SUBLANE
    tile_rows = min(_MAX_TILE_ROWS, rows_aligned)
    rows = pl.cdiv(rows_aligned, tile_rows) * tile_rows
    pad = rows * _LANE - count
    if pad:
        p = jnp.pad(p, (0, pad))
        t = jnp.pad(t, (0, pad))
    p2 = p.reshape(rows, _LANE)
    t2 = t.reshape(rows, _LANE)

    # Scalar (weighted / N) lives in SMEM; applied once at finalize.
    scale = (jnp.asarray(weighted, jnp.float32) / jnp.float32(count)).reshape(1, 1)

    grid = (rows // tile_rows,)
    out = pl.pallas_call(
        functools.partial(_weighted_loss_kernel, loss_type=loss_type),
        out_shape=jax.ShapeDtypeStruct((1, 1), jnp.float32),
        grid_spec=pltpu.PrefetchScalarGridSpec(
            num_scalar_prefetch=0,
            grid=grid,
            in_specs=[
                pl.BlockSpec(memory_space=pltpu.MemorySpace.SMEM),   # scale (1,1)
                pl.BlockSpec((tile_rows, _LANE), lambda i: (i, 0)),  # pred tile
                pl.BlockSpec((tile_rows, _LANE), lambda i: (i, 0)),  # target tile
            ],
            out_specs=pl.BlockSpec((1, 1), lambda i: (0, 0)),        # accumulator output
            scratch_shapes=[pltpu.VMEM((1, 1), jnp.float32)],
        ),
        compiler_params=pltpu.CompilerParams(
            dimension_semantics=("arbitrary",),   # reduction axis (carries accumulator)
            vmem_limit_bytes=32 * 1024 * 1024,
        ),
    )(scale, p2, t2)
    return out[0, 0]


if __name__ == "__main__":
    key = jax.random.PRNGKey(0)
    kp, kt = jax.random.split(key)

    # pred, target: [batch_size, 2, traj_length]
    B, C, T = 4, 2, 16
    pred = jax.random.normal(kp, (B, C, T), dtype=jnp.float32)
    target = jax.random.normal(kt, (B, C, T), dtype=jnp.float32)

    # WeightedL2 (MSE, reduction='none') with the default scalar weight.
    out = weighted_loss(pred, target, weighted=1.0, loss_type="l2")
    out = jax.block_until_ready(out)
    ref = jnp.mean((pred - target) ** 2 * 1.0)
    assert out.shape == ()
    assert jnp.allclose(out, ref, atol=1e-6, rtol=1e-5), (out, ref)

    # WeightedL1 with a non-default scalar weight.
    out_l1 = jax.block_until_ready(weighted_loss(pred, target, weighted=0.5, loss_type="l1"))
    ref_l1 = jnp.mean(jnp.abs(pred - target) * 0.5)
    assert jnp.allclose(out_l1, ref_l1, atol=1e-6, rtol=1e-5), (out_l1, ref_l1)

    print("KERNEL_OK")
</pallas_src>

<mosaic_0001>
module attributes {stable_mosaic.version = 11 : i64} {
  func.func @_weighted_loss_kernel(%arg0: i32, %arg1: memref<1x1xf32, #tpu.memory_space<smem>>, %arg2: memref<8x128xf32, #tpu.memory_space<vmem>>, %arg3: memref<8x128xf32, #tpu.memory_space<vmem>>, %arg4: memref<1x1xf32, #tpu.memory_space<vmem>>, %arg5: memref<1x1xf32, #tpu.memory_space<vmem>>) attributes {dimension_semantics = [#tpu.dimension_semantics<arbitrary>], iteration_bounds = array<i64: 1>, scalar_prefetch = 0 : i64, scratch_operands = 1 : i64, tpu.core_type = #tpu.core_type<tc>, window_params = [{transform_indices = @transform_0, window_bounds = array<i64: 1, 1>}, {transform_indices = @transform_1, window_bounds = array<i64: 8, 128>}, {transform_indices = @transform_2, window_bounds = array<i64: 8, 128>}, {pipeline_mode = #tpu.pipeline_mode<synchronous>, transform_indices = @transform_3, window_bounds = array<i64: 1, 1>}]} {
    %c0_i32 = arith.constant 0 : i32
    %0 = arith.cmpi eq, %arg0, %c0_i32 : i32
    %1 = arith.extui %0 : i1 to i32
    %c0_i32_0 = arith.constant 0 : i32
    %2 = arith.cmpi ne, %1, %c0_i32_0 : i32
    scf.if %2 {
      %cst_10 = arith.constant 0.000000e+00 : f32
      %18 = vector.broadcast %cst_10 : f32 to vector<1x1xf32>
      %c0_11 = arith.constant 0 : index
      %c0_12 = arith.constant 0 : index
      %19 = vector.load %arg5[%c0_11, %c0_12] : memref<1x1xf32, #tpu.memory_space<vmem>>, vector<1x1xf32>
      tpu.vector_store %arg5[%c0_11, %c0_12], %18 {strides = array<i32>} : memref<1x1xf32, #tpu.memory_space<vmem>>, vector<1x1xf32>,
    } else {
    }
    %c0 = arith.constant 0 : index
    %c0_1 = arith.constant 0 : index
    %3 = vector.load %arg2[%c0, %c0_1] : memref<8x128xf32, #tpu.memory_space<vmem>>, vector<8x128xf32>
    %c0_2 = arith.constant 0 : index
    %c0_3 = arith.constant 0 : index
    %4 = vector.load %arg3[%c0_2, %c0_3] : memref<8x128xf32, #tpu.memory_space<vmem>>, vector<8x128xf32>
    %5 = arith.subf %3, %4 : vector<8x128xf32>
    %6 = arith.mulf %5, %5 : vector<8x128xf32>
    %c0_4 = arith.constant 0 : index
    %c0_5 = arith.constant 0 : index
    %7 = vector.load %arg5[%c0_4, %c0_5] : memref<1x1xf32, #tpu.memory_space<vmem>>, vector<1x1xf32>
    %8 = vector.shape_cast %6 : vector<8x128xf32> to vector<1x8x128xf32>
    %cst = arith.constant dense<0.000000e+00> : vector<1xf32>
    %9 = vector.multi_reduction <add>, %8, %cst [1, 2] : vector<1x8x128xf32> to vector<1xf32>
    %10 = vector.shape_cast %9 : vector<1xf32> to vector<1x1x1xf32>
    %11 = vector.extract %10[0, 0, 0] : f32 from vector<1x1x1xf32>
    %12 = vector.broadcast %11 : f32 to vector<1x1xf32>
    %13 = arith.addf %7, %12 : vector<1x1xf32>
    %c0_6 = arith.constant 0 : index
    %c0_7 = arith.constant 0 : index
    %14 = vector.load %arg5[%c0_6, %c0_7] : memref<1x1xf32, #tpu.memory_space<vmem>>, vector<1x1xf32>
    tpu.vector_store %arg5[%c0_6, %c0_7], %13 {strides = array<i32>} : memref<1x1xf32, #tpu.memory_space<vmem>>, vector<1x1xf32>,
    %c0_i32_8 = arith.constant 0 : i32
    %15 = arith.cmpi eq, %arg0, %c0_i32_8 : i32
    %16 = arith.extui %15 : i1 to i32
    %c0_i32_9 = arith.constant 0 : i32
    %17 = arith.cmpi ne, %16, %c0_i32_9 : i32
    scf.if %17 {
      %c0_10 = arith.constant 0 : index
      %c0_11 = arith.constant 0 : index
      %18 = vector.load %arg5[%c0_10, %c0_11] : memref<1x1xf32, #tpu.memory_space<vmem>>, vector<1x1xf32>
      %c0_12 = arith.constant 0 : index
      %c0_13 = arith.constant 0 : index
      %19 = memref.load %arg1[%c0_12, %c0_13] : memref<1x1xf32, #tpu.memory_space<smem>>
      %20 = vector.broadcast %19 : f32 to vector<1x1xf32>
      %21 = arith.mulf %18, %20 : vector<1x1xf32>
      %c0_14 = arith.constant 0 : index
      %c0_15 = arith.constant 0 : index
      %22 = vector.load %arg4[%c0_14, %c0_15] : memref<1x1xf32, #tpu.memory_space<vmem>>, vector<1x1xf32>
      tpu.vector_store %arg4[%c0_14, %c0_15], %21 {strides = array<i32>} : memref<1x1xf32, #tpu.memory_space<vmem>>, vector<1x1xf32>,
    } else {
    }
    return
  }
  func.func @transform_0(%arg0: i32) -> (i32, i32) {
    %c0_i32 = arith.constant 0 : i32
    %c0_i32_0 = arith.constant 0 : i32
    %c0_i32_1 = arith.constant 0 : i32
    return %c0_i32, %c0_i32_0 : i32, i32
  }
  func.func @transform_1(%arg0: i32) -> (i32, i32) {
    %c0_i32 = arith.constant 0 : i32
    %c0_i32_0 = arith.constant 0 : i32
    return %arg0, %c0_i32 : i32, i32
  }
  func.func @transform_2(%arg0: i32) -> (i32, i32) {
    %c0_i32 = arith.constant 0 : i32
    %c0_i32_0 = arith.constant 0 : i32
    return %arg0, %c0_i32 : i32, i32
  }
  func.func @transform_3(%arg0: i32) -> (i32, i32) {
    %c0_i32 = arith.constant 0 : i32
    %c0_i32_0 = arith.constant 0 : i32
    %c0_i32_1 = arith.constant 0 : i32
    return %c0_i32, %c0_i32_0 : i32, i32
  }
}

</mosaic_0001>

<bundles_post_ra>
// kernel: tpu_custom_call.1
= control target key start
LH: loop header
LB: loop body
LE: loop exit
PB: predicated region body
PF: predicated region fallthrough
CT: control target
= control target key end

     0   :  { %9 = vsyncpa [#allocation5], 0  ;;  %s217_s0 = inlined_call_operand.<no memory space> [shape: f32[1,1], index: 0, kind: input, shape index: {}]   ;;  %s218_s1 = inlined_call_operand.hbm [shape: f32[8,128], index: 1, kind: input, shape index: {}]   ;;  %s219_s2 = inlined_call_operand.hbm [shape: f32[8,128], index: 2, kind: input, shape index: {}]   ;;  %s220_s3 = inlined_call_operand.hbm [shape: f32[1,1], index: 3, kind: output, shape index: {}]  }
   0x1   :  { %10 = vsyncpa [#allocation8], 0 }
   0x2   :  { %11 = vsyncpa [#allocation6], 0  ;;  %s19_s14 = sshll.u32 %s218_s1, 4  ;;  %s178_s15 = smov [#allocation4]   ;;  %s20_s14 = int_to_ptr.hbm [resolvable:$true] %s19_s14 }
   0x3   :  { %s21_s16 = sshll.u32 %s178_s15, 4  ;;  %s30_s19 = sshll.u32 %s219_s2, 4  ;;  %s22_s16 = int_to_ptr.vmem [resolvable:$true] %s21_s16  ;;  %s31_s19 = int_to_ptr.hbm [resolvable:$true] %s30_s19 }
   0x4   :  { %24 = dma.hbm_to_vmem [thread:$0]  %s20_s14, 128, %s22_s16, [#allocation5]  }
   0x5   :  { %s179_s20 = smov [#allocation7]  }
   0x6   :  { %s32_s21 = sshll.u32 %s179_s20, 4  ;;  %s33_s21 = int_to_ptr.vmem [resolvable:$true] %s32_s21 }
   0x7   :  { %35 = dma.hbm_to_vmem [thread:$0]  %s31_s19, 128, %s33_s21, [#allocation8]  }
   0x8   :  { %172 = dma.done.wait [#allocation5], 128  }
   0x9   :  { %173 = vsyncadd [#allocation5], 4294967168 }
   0xa   :  { %174 = dma.done.wait [#allocation8], 128  }
   0xb   :  { %175 = vsyncadd [#allocation8], 4294967168  ;;  %v50_v0 = vld [vmem:[#allocation4] sm:$0xff]  ;;  %v51_v1 = vld [vmem:[#allocation7] sm:$0xff]  ;;  %vm48_vm0 = vcmask 0   ;;  %v180_v4 = vmov 0.0   ;;  %v73_v15 = vstv %s217_s0 }
   0xc   :  { %v52_v2 = vsub.f32 %v50_v0, %v51_v1  ;;  %49 = vst.msk [vmem:[#allocation2] sm:$0x1] %vm48_vm0, %v180_v4  ;;  %s181_s23 = smov [#allocation9]   ;;  %s83_s27 = sshll.u32 %s220_s3, 4  ;;  %s84_s27 = int_to_ptr.hbm [resolvable:$true] %s83_s27 }
   0xd   :  { %s81_s24 = sshll.u32 %s181_s23, 4  ;;  %s82_s24 = int_to_ptr.vmem [resolvable:$true] %s81_s24 }
   0xe   :  { %v53_v3 = vmul.f32 %v52_v2, %v52_v2 }
  0x10   :  { %55 = vadd.xlane.f32.xlu0 %v53_v3 }
  0x13   :  { %v54_v12 = vld [vmem:[#allocation2] sm:$0x1] }
  0x83   :  { %v56_v5 = vpop.xlane.xlu0 %55 }
  0x84   :  { %v57_v6 = vrot.slane %v56_v5, 4 }
  0x86   :  { %v58_v7 = vadd.f32 %v57_v6, %v56_v5 }
  0x88   :  { %v59_v8 = vrot.slane %v58_v7, 2 }
  0x8a   :  { %v60_v9 = vadd.f32 %v59_v8, %v58_v7 }
  0x8c   :  { %v61_v10 = vrot.slane %v60_v9, 1 }
  0x8e   :  { %v62_v11 = vadd.f32 %v61_v10, %v60_v9 }
  0x90   :  { %94 = vpush %v62_v11 }
  0xc1   :  { %s95_s1 = spop %94 }
  0xc2   :  { %v64_v13 = vstv %s95_s1 }
  0xc3   :  { %v65_v14 = vadd.f32 %v64_v13, %v54_v12 }
  0xc5   :  { %67 = vst.msk [vmem:[#allocation2] sm:$0x1] %vm48_vm0, %v65_v14 }
  0xcc   :  { %v71_v16 = vld [vmem:[#allocation2] sm:$0x1] }
  0xcd   :  { %v74_v17 = vmul.f32 %v73_v15, %v71_v16 }
  0xcf   :  { %75 = vst.msk [vmem:[#allocation9] sm:$0x1] %vm48_vm0, %v74_v17 }
  0xd0   :  { %86 = dma.vmem_to_hbm [thread:$0]  %s82_s24, 16, %s84_s27, [#allocation6]  }
  0xd1   :  { %176 = dma.done.wait [#allocation6], 16  }
  0xd2   :  { %177 = vsyncadd [#allocation6], 4294967280 }
  0xd3   :  { %91 = vsyncpa [#allocation5], 1 }
  0xd4   :  { %92 = vsyncpa [#allocation8], 1 }
  0xd5   :  { %93 = vsyncpa [#allocation6], 1 }

</bundles_post_ra>
